<compile_context>
chip_gen: v7x
topology: tpu7x:2x2x1
jax: 0.10.0
libtpu: 0.0.40
codegen_flags: <defaults>
</compile_context>

<pallas_src>
import math

import jax
import jax.numpy as jnp
from jax.experimental import pallas as pl
from jax.experimental.pallas import tpu as pltpu


# -----------------------------------------------------------------------------
# Pallas kernel: one grid step processes `bt` images, all refs lane-dense.
# -----------------------------------------------------------------------------
def fasternet_block_kernel(x1_ref, x2p_ref, res_ref, w1_ref, bnb_ref, w2_ref,
                           o_ref):
    """W pixels packed per 128-lane row (one image row per lane row).

    x1_ref  : (bt, H,   W*Cc) bf16  pass-through half (permuted channels [0,Cc))
    x2p_ref : (bt, H+2, W*Cc) bf16  conv half, zero-padded by 1 image row top/bottom
    res_ref : (bt, H,   W*C)  f32   residual (original x, NHWC-flat); aliased to o_ref
    w1_ref  : (4*W*Cc, W*Ce)  bf16  fused [conv1a | w3(ky=0..2) @ conv1b] banded weight
    bnb_ref : (1, W*Ce)       f32   folded BN bias, tiled per pixel slot
    w2_ref  : (W*Ce, W*C)     bf16  block-diagonal conv2 weight
    o_ref   : (bt, H,   W*C)  f32   output (memory order == flat (H*W, C))
    """
    bt, H, kc = x1_ref.shape
    m = bt * H

    # In-kernel "im2col": the three ky taps are row-window slices of the padded
    # conv half (dy shifts).  The dx shifts and the W-boundary zero padding are
    # encoded in the banded structure of w1_ref, so no lane shuffling is needed.
    x2p = x2p_ref[...]
    pieces = [x1_ref[...].reshape(m, kc)]
    for ky in range(3):
        pieces.append(x2p[:, ky:ky + H, :].reshape(m, kc))
    lhs = jnp.concatenate(pieces, axis=-1)                    # (m, 4*W*Cc)

    # PConv 3x3 + conv1 (1x1 expand, BN scale pre-folded): ONE MXU matmul.
    h = jnp.dot(lhs, w1_ref[...], preferred_element_type=jnp.float32)
    # BN bias + ReLU (kept in f32 on the VPU; v5e has no bf16 VPU).
    h = jnp.maximum(h + bnb_ref[...], 0.0)

    # conv2 (1x1 project) + residual add (DropPath = identity at rate 0.0).
    z = jnp.dot(h.astype(jnp.bfloat16), w2_ref[...],
                preferred_element_type=jnp.float32)
    o_ref[...] = res_ref[...] + z.reshape(o_ref.shape)


# -----------------------------------------------------------------------------
# One-time parameter preparation (BN fold, conv fold, banded/block-diag weights).
# -----------------------------------------------------------------------------
def _block_diag(w, n):
    """(k, m) -> (n*k, n*m) block-diagonal matrix with n copies of w."""
    k, m = w.shape
    eye = jnp.eye(n, dtype=w.dtype)
    return (eye[:, None, :, None] * w[None, :, None, :]).reshape(n * k, n * m)


def _banded(per_tap_mats, n):
    """per_tap_mats[kx] (k, m) goes on block-diagonal p = q + (kx - 1).

    Out-of-range blocks are simply absent, which implements the zero padding at
    the image width boundary for free.
    """
    k, m = per_tap_mats[0].shape
    out = jnp.zeros((n * k, n * m), per_tap_mats[0].dtype)
    for kx, g in enumerate(per_tap_mats):
        s = jnp.eye(n, k=1 - kx, dtype=g.dtype)      # s[p, q] = 1 iff p == q + (kx-1)
        out = out + (s[:, None, :, None] * g[None, :, None, :]).reshape(n * k, n * m)
    return out


def prepare_kernel_params(params, C, W):
    """Fold BN into conv1, fold the 3x3 PConv weight into conv1's second-half
    weight, and lay everything out for the one-image-row-per-lane-row packing."""
    Cc = C // 2
    Ce = params["w1"].shape[1]
    eps = 1e-5

    bn_scale = params["bn_gamma"] / jnp.sqrt(params["bn_var"] + eps)   # (Ce,)
    bn_bias = params["bn_beta"] - params["bn_mean"] * bn_scale         # (Ce,)

    w1f = params["w1"] * bn_scale[None, :]           # fold BN scale into conv1
    w1a, w1b = w1f[:Cc], w1f[Cc:]                    # pass-through / conv halves

    # Fused expand weight rows: [x1 | tap(ky=0) | tap(ky=1) | tap(ky=2)].
    parts = [_block_diag(w1a, W)]
    for ky in range(3):
        taps = [params["w3"][ky, kx] @ w1b for kx in range(3)]   # (Cc, Ce) each
        parts.append(_banded(taps, W))
    w1_fused = jnp.concatenate(parts, axis=0)        # (4*W*Cc, W*Ce)

    return {
        "w_eca": params["w_eca"],
        "w1_fused": w1_fused.astype(jnp.bfloat16),
        "w2_blk": _block_diag(params["w2"], W).astype(jnp.bfloat16),
        "bnb_blk": jnp.tile(bn_bias, W).reshape(1, W * Ce).astype(jnp.float32),
    }


# -----------------------------------------------------------------------------
# Forward pass matching FasterNetBlock2_2.forward (inference-mode BN).
# -----------------------------------------------------------------------------
def fasternet_block2_2(x_nchw, kp, *, bt=None):
    """x_nchw: (B, C, H, W) float32. Returns (B, H*W, C) float32."""
    B, C, H, W = x_nchw.shape
    Cc = C // 2
    Ce = kp["bnb_blk"].shape[-1] // W
    if bt is None:
        bt = max(1, B // 2)          # keep grid >= 2 steps (two TensorCores on v7x)
    assert C % 2 == 0 and B % bt == 0
    assert (W * Cc) % 128 == 0, "W * (C//2) must be a multiple of 128 (lane-dense rows)"

    # ---- ECA layer (data-dependent per-batch channel permutation; JAX glue) ----
    xh = jnp.transpose(x_nchw, (0, 2, 3, 1))         # single NCHW -> NHWC transpose
    pooled = xh.mean(axis=(1, 2))                    # (B, C) global average pool
    pp = jnp.pad(pooled, ((0, 0), (2, 2)))           # Conv1d(1,1,k=5,pad=2,no bias)
    score = jax.nn.sigmoid(sum(kp["w_eca"][i] * pp[:, i:i + C] for i in range(5)))
    # torch.topk(k=C, largest=True, sorted=True) + index_select == permute
    # channels by descending attention score.
    # TODO(synk): data-dependent gather stays in JAX glue; tie-break order on
    # exact score ties may differ from torch.topk.
    idx = jnp.argsort(-score, axis=1)                # (B, C)
    xp = jnp.take_along_axis(xh, idx[:, None, None, :], axis=3).astype(jnp.bfloat16)

    # ---- lane-dense kernel operands (pure reshapes in NHWC order; NO im2col) ----
    x1_blk = xp[..., :Cc].reshape(B, H, W * Cc)                          # bf16
    x2p_blk = jnp.pad(xp[..., Cc:], ((0, 0), (1, 1), (0, 0), (0, 0))     # pad H by 1
                      ).reshape(B, H + 2, W * Cc)                        # bf16
    res_blk = xh.reshape(B, H, W * C)                                    # f32 residual

    kc = W * Cc
    out_blk = pl.pallas_call(
        fasternet_block_kernel,
        out_shape=jax.ShapeDtypeStruct((B, H, W * C), jnp.float32),
        grid_spec=pltpu.PrefetchScalarGridSpec(
            num_scalar_prefetch=0,
            grid=(B // bt,),
            in_specs=[
                pl.BlockSpec((bt, H, kc), lambda b: (b, 0, 0)),
                pl.BlockSpec((bt, H + 2, kc), lambda b: (b, 0, 0)),
                pl.BlockSpec((bt, H, W * C), lambda b: (b, 0, 0)),
                pl.BlockSpec((4 * kc, W * Ce), lambda b: (0, 0)),   # resident weights
                pl.BlockSpec((1, W * Ce), lambda b: (0, 0)),
                pl.BlockSpec((W * Ce, W * C), lambda b: (0, 0)),
            ],
            out_specs=pl.BlockSpec((bt, H, W * C), lambda b: (b, 0, 0)),
        ),
        # Reuse the residual's HBM buffer for the output (no extra allocation).
        input_output_aliases={2: 0},
        compiler_params=pltpu.CompilerParams(
            # On v7x, core-parallel semantics / pl.core_map would *guarantee* the
            # batch axis splits across the two TensorCores; plain "parallel" is
            # kept here for portability across v5e/v6e/v7x.
            dimension_semantics=("parallel",),
            vmem_limit_bytes=32 * 1024 * 1024),
    )(x1_blk, x2p_blk, res_blk, kp["w1_fused"], kp["bnb_blk"], kp["w2_blk"])

    # memory order of (B, H, W*C) is exactly (B, H*W, C); reshape is free.
    return out_blk.reshape(B, H * W, C)


# -----------------------------------------------------------------------------
# Pure-JAX f32 reference (same semantics, same ECA tie-breaking) for checking.
# -----------------------------------------------------------------------------
def reference_forward(x_nchw, params):
    B, C, H, W = x_nchw.shape
    Cc = C // 2
    eps = 1e-5
    xh = jnp.transpose(x_nchw, (0, 2, 3, 1))
    pooled = xh.mean(axis=(1, 2))
    pp = jnp.pad(pooled, ((0, 0), (2, 2)))
    score = jax.nn.sigmoid(sum(params["w_eca"][i] * pp[:, i:i + C] for i in range(5)))
    idx = jnp.argsort(-score, axis=1)
    xp = jnp.take_along_axis(xh, idx[:, None, None, :], axis=3)
    x1, x2 = xp[..., :Cc], xp[..., Cc:]
    x2p = jnp.pad(x2, ((0, 0), (1, 1), (1, 1), (0, 0)))
    conv = jnp.zeros((B, H, W, Cc), jnp.float32)
    for dy in range(3):
        for dx in range(3):
            conv = conv + jnp.einsum("bhwi,io->bhwo",
                                     x2p[:, dy:dy + H, dx:dx + W, :],
                                     params["w3"][dy, dx])
    y = jnp.concatenate([x1, conv], axis=-1)
    h = jnp.einsum("bhwc,ce->bhwe", y, params["w1"])
    bn_scale = params["bn_gamma"] / jnp.sqrt(params["bn_var"] + eps)
    bn_bias = params["bn_beta"] - params["bn_mean"] * bn_scale
    h = jnp.maximum(h * bn_scale + bn_bias, 0.0)
    z = jnp.einsum("bhwe,ec->bhwc", h, params["w2"])
    return (xh + z).reshape(B, H * W, C)


def init_params(C, expand_ratio=2, seed=0):
    """Deterministic synthetic parameters (shapes from the module __init__).
    Conv weights stored pre-transposed: (out,in,kh,kw) -> (kh,kw,in,out) / (in,out)."""
    Cc = C // 2
    Ce = int(C * expand_ratio)
    keys = jax.random.split(jax.random.PRNGKey(seed), 8)
    return {
        # Eca_layer.conv : Conv1d(1, 1, kernel_size=5, bias=False)
        "w_eca": 0.3 * jax.random.normal(keys[0], (5,), jnp.float32),
        # PConv2_2.conv : Conv2d(Cc, Cc, 3, padding=1, bias=False)
        "w3": jax.random.normal(keys[1], (3, 3, Cc, Cc), jnp.float32)
              * (1.0 / (3.0 * math.sqrt(Cc))),
        # conv1 : Conv2d(C, Ce, 1, bias=False)
        "w1": jax.random.normal(keys[2], (C, Ce), jnp.float32) * (1.0 / math.sqrt(C)),
        # conv2 : Conv2d(Ce, C, 1, bias=False)
        "w2": jax.random.normal(keys[3], (Ce, C), jnp.float32) * (1.0 / math.sqrt(Ce)),
        # BatchNorm2d(Ce) (inference-mode running stats)
        "bn_gamma": 1.0 + 0.1 * jax.random.normal(keys[4], (Ce,), jnp.float32),
        "bn_beta": 0.1 * jax.random.normal(keys[5], (Ce,), jnp.float32),
        "bn_mean": 0.1 * jax.random.normal(keys[6], (Ce,), jnp.float32),
        "bn_var": jnp.abs(jax.random.normal(keys[7], (Ce,), jnp.float32)) + 0.5,
    }


if __name__ == "__main__":
    B, C, H, W = 2, 16, 16, 16          # Cc=8 -> W*Cc = 128 lanes per image row
    params = init_params(C, expand_ratio=2, seed=0)
    kp = prepare_kernel_params(params, C, W)
    x = jax.random.normal(jax.random.PRNGKey(0), (B, C, H, W), jnp.float32)

    fwd = jax.jit(fasternet_block2_2)
    out = jax.block_until_ready(fwd(x, kp))

    assert out.shape == (B, H * W, C), out.shape
    assert bool(jnp.all(jnp.isfinite(out)))

    # Tolerance check vs f32 reference (kernel uses bf16 MXU operands).
    ref = reference_forward(x, params)
    max_err = float(jnp.max(jnp.abs(out - ref)))
    assert max_err < 0.3, f"max abs err vs reference: {max_err}"

    print("KERNEL_OK")
</pallas_src>

<mosaic_0001>
module attributes {stable_mosaic.version = 11 : i64} {
  func.func @fasternet_block_kernel(%arg0: i32, %arg1: memref<1x16x128xbf16, #tpu.memory_space<vmem>>, %arg2: memref<1x18x128xbf16, #tpu.memory_space<vmem>>, %arg3: memref<1x16x256xf32, #tpu.memory_space<vmem>>, %arg4: memref<512x512xbf16, #tpu.memory_space<vmem>>, %arg5: memref<1x512xf32, #tpu.memory_space<vmem>>, %arg6: memref<512x256xbf16, #tpu.memory_space<vmem>>, %arg7: memref<1x16x256xf32, #tpu.memory_space<vmem>>) attributes {dimension_semantics = [#tpu.dimension_semantics<parallel>], iteration_bounds = array<i64: 2>, scalar_prefetch = 0 : i64, scratch_operands = 0 : i64, tpu.core_type = #tpu.core_type<tc>, window_params = [{transform_indices = @transform_0, window_bounds = array<i64: 1, 16, 128>}, {transform_indices = @transform_1, window_bounds = array<i64: 1, 18, 128>}, {transform_indices = @transform_2, window_bounds = array<i64: 1, 16, 256>}, {pipeline_mode = #tpu.pipeline_mode<synchronous>, transform_indices = @transform_3, window_bounds = array<i64: 512, 512>}, {pipeline_mode = #tpu.pipeline_mode<synchronous>, transform_indices = @transform_4, window_bounds = array<i64: 1, 512>}, {pipeline_mode = #tpu.pipeline_mode<synchronous>, transform_indices = @transform_5, window_bounds = array<i64: 512, 256>}, {transform_indices = @transform_6, window_bounds = array<i64: 1, 16, 256>}]} {
    %c0 = arith.constant 0 : index
    %c0_0 = arith.constant 0 : index
    %c0_1 = arith.constant 0 : index
    %0 = vector.load %arg2[%c0, %c0_0, %c0_1] : memref<1x18x128xbf16, #tpu.memory_space<vmem>>, vector<1x18x128xbf16>
    %c0_2 = arith.constant 0 : index
    %c0_3 = arith.constant 0 : index
    %c0_4 = arith.constant 0 : index
    %1 = vector.load %arg1[%c0_2, %c0_3, %c0_4] : memref<1x16x128xbf16, #tpu.memory_space<vmem>>, vector<1x16x128xbf16>
    %2 = vector.shape_cast %1 : vector<1x16x128xbf16> to vector<16x128xbf16>
    %3 = vector.extract_strided_slice %0 {offsets = [0, 0, 0], sizes = [1, 16, 128], strides = [1, 1, 1]} : vector<1x18x128xbf16> to vector<1x16x128xbf16>
    %4 = vector.shape_cast %3 : vector<1x16x128xbf16> to vector<16x128xbf16>
    %5 = vector.extract_strided_slice %0 {offsets = [0, 1, 0], sizes = [1, 16, 128], strides = [1, 1, 1]} : vector<1x18x128xbf16> to vector<1x16x128xbf16>
    %6 = vector.shape_cast %5 : vector<1x16x128xbf16> to vector<16x128xbf16>
    %7 = vector.extract_strided_slice %0 {offsets = [0, 2, 0], sizes = [1, 16, 128], strides = [1, 1, 1]} : vector<1x18x128xbf16> to vector<1x16x128xbf16>
    %8 = vector.shape_cast %7 : vector<1x16x128xbf16> to vector<16x128xbf16>
    %9 = tpu.concatenate %2, %4, %6, %8 in 1 : vector<16x128xbf16>, vector<16x128xbf16>, vector<16x128xbf16>, vector<16x128xbf16> -> vector<16x512xbf16>
    %c0_5 = arith.constant 0 : index
    %c0_6 = arith.constant 0 : index
    %10 = vector.load %arg4[%c0_5, %c0_6] : memref<512x512xbf16, #tpu.memory_space<vmem>>, vector<512x512xbf16>
    %cst = arith.constant dense<0.000000e+00> : vector<16x512xf32>
    %11 = tpu.matmul %9, %10, %cst {dimension_numbers = #tpu.dot_dimension_numbers<[1], [0], [0], [1], [0, 0, 1, 1], [], []>} : vector<16x512xbf16>, vector<512x512xbf16>, vector<16x512xf32> -> vector<16x512xf32>
    %c0_7 = arith.constant 0 : index
    %c0_8 = arith.constant 0 : index
    %12 = vector.load %arg5[%c0_7, %c0_8] : memref<1x512xf32, #tpu.memory_space<vmem>>, vector<1x512xf32>
    %13 = vector.broadcast %12 : vector<1x512xf32> to vector<16x512xf32>
    %14 = arith.addf %11, %13 : vector<16x512xf32>
    %cst_9 = arith.constant 0.000000e+00 : f32
    %15 = vector.broadcast %cst_9 : f32 to vector<16x512xf32>
    %16 = arith.maximumf %14, %15 : vector<16x512xf32>
    %17 = arith.truncf %16 : vector<16x512xf32> to vector<16x512xbf16>
    %c0_10 = arith.constant 0 : index
    %c0_11 = arith.constant 0 : index
    %18 = vector.load %arg6[%c0_10, %c0_11] : memref<512x256xbf16, #tpu.memory_space<vmem>>, vector<512x256xbf16>
    %cst_12 = arith.constant dense<0.000000e+00> : vector<16x256xf32>
    %19 = tpu.matmul %17, %18, %cst_12 {dimension_numbers = #tpu.dot_dimension_numbers<[1], [0], [0], [1], [0, 0, 1, 1], [], []>} : vector<16x512xbf16>, vector<512x256xbf16>, vector<16x256xf32> -> vector<16x256xf32>
    %c0_13 = arith.constant 0 : index
    %c0_14 = arith.constant 0 : index
    %c0_15 = arith.constant 0 : index
    %20 = vector.load %arg3[%c0_13, %c0_14, %c0_15] : memref<1x16x256xf32, #tpu.memory_space<vmem>>, vector<1x16x256xf32>
    %21 = vector.shape_cast %19 : vector<16x256xf32> to vector<1x16x256xf32>
    %22 = arith.addf %20, %21 : vector<1x16x256xf32>
    %c0_16 = arith.constant 0 : index
    %c0_17 = arith.constant 0 : index
    %c0_18 = arith.constant 0 : index
    %23 = vector.load %arg7[%c0_16, %c0_17, %c0_18] : memref<1x16x256xf32, #tpu.memory_space<vmem>>, vector<1x16x256xf32>
    tpu.vector_store %arg7[%c0_16, %c0_17, %c0_18], %22 {strides = array<i32>} : memref<1x16x256xf32, #tpu.memory_space<vmem>>, vector<1x16x256xf32>,
    return
  }
  func.func @transform_0(%arg0: i32) -> (i32, i32, i32) {
    %c0_i32 = arith.constant 0 : i32
    %c0_i32_0 = arith.constant 0 : i32
    %c0_i32_1 = arith.constant 0 : i32
    return %arg0, %c0_i32, %c0_i32_0 : i32, i32, i32
  }
  func.func @transform_1(%arg0: i32) -> (i32, i32, i32) {
    %c0_i32 = arith.constant 0 : i32
    %c0_i32_0 = arith.constant 0 : i32
    %c0_i32_1 = arith.constant 0 : i32
    return %arg0, %c0_i32, %c0_i32_0 : i32, i32, i32
  }
  func.func @transform_2(%arg0: i32) -> (i32, i32, i32) {
    %c0_i32 = arith.constant 0 : i32
    %c0_i32_0 = arith.constant 0 : i32
    %c0_i32_1 = arith.constant 0 : i32
    return %arg0, %c0_i32, %c0_i32_0 : i32, i32, i32
  }
  func.func @transform_3(%arg0: i32) -> (i32, i32) {
    %c0_i32 = arith.constant 0 : i32
    %c0_i32_0 = arith.constant 0 : i32
    %c0_i32_1 = arith.constant 0 : i32
    return %c0_i32, %c0_i32_0 : i32, i32
  }
  func.func @transform_4(%arg0: i32) -> (i32, i32) {
    %c0_i32 = arith.constant 0 : i32
    %c0_i32_0 = arith.constant 0 : i32
    %c0_i32_1 = arith.constant 0 : i32
    return %c0_i32, %c0_i32_0 : i32, i32
  }
  func.func @transform_5(%arg0: i32) -> (i32, i32) {
    %c0_i32 = arith.constant 0 : i32
    %c0_i32_0 = arith.constant 0 : i32
    %c0_i32_1 = arith.constant 0 : i32
    return %c0_i32, %c0_i32_0 : i32, i32
  }
  func.func @transform_6(%arg0: i32) -> (i32, i32, i32) {
    %c0_i32 = arith.constant 0 : i32
    %c0_i32_0 = arith.constant 0 : i32
    %c0_i32_1 = arith.constant 0 : i32
    return %arg0, %c0_i32, %c0_i32_0 : i32, i32, i32
  }
}

</mosaic_0001>

<bundles_post_ra>
// kernel: fasternet_block2_2.1
= control target key start
LH: loop header
LB: loop body
LE: loop exit
PB: predicated region body
PF: predicated region fallthrough
CT: control target
= control target key end

     0   :  { %s2441_s21 = smov 0   ;;  %s3079_s0 = inlined_call_operand.vmem [shape: bf16[2,16,128], index: 0, kind: input, shape index: {}]   ;;  %s3080_s1 = inlined_call_operand.vmem [shape: bf16[2,18,128], index: 1, kind: input, shape index: {}]   ;;  %s3081_s2 = inlined_call_operand.vmem [shape: f32[2,16,256], index: 2, kind: input, shape index: {}, may-alias: {2,6}]   ;;  %s3082_s3 = inlined_call_operand.vmem [shape: bf16[512,512], index: 3, kind: input, shape index: {}]   ;;  %s3083_s4 = inlined_call_operand.vmem [shape: f32[1,512], index: 4, kind: input, shape index: {}]   ;;  %s3084_s5 = inlined_call_operand.vmem [shape: bf16[512,256], index: 5, kind: input, shape index: {}]   ;;  %s3085_s6 = inlined_call_operand.vmem [shape: f32[2,16,256], index: 6, kind: output, shape index: {}, may-alias: {2,6}]  }
   0x1 LB: > { %s1866_s22 = sadd.s32 4294967295, %s2404_s21   ;;  %p1870_p0 = scmp.ge.s32.totalorder %s2404_s21, 1  ;;  %s2404_s21 = sphi %s2441_s21, %s16_s21  }
   0x2   : > { %p232_p1 = scmp.lt.s32.totalorder %s2404_s21, 3 }
   0x4   : > { %p233_p2 = pnand %p1870_p0, %p232_p1 }
   0x5   : > { %v2107_v0 = vld [vmem:[%s3082_s3 + $0x4] ss:$16 sps:$4 sm:$0xff] (!%p233_p2)   ;;  %v2109_v1 = vld [vmem:[%s3082_s3] ss:$16 sps:$4 sm:$0xff] (!%p233_p2)   ;;  %p272_p3 = scmp.lt.s32.totalorder (!%p233_p2), %s1866_s22, 1  ;;  %vm326_vm0 = vcmask (!%p233_p2), 1046528  }
   0x6   : > { %236 = sbr.rel (%p233_p2) target bundleno = 638 (0x27e), region = 44  ;;  %1121 = vmatprep.subr.bf16.mxu1 (!%p233_p2), %v2107_v0  ;;  %v2110_v2 = vld [vmem:[%s3082_s3 + $0x204] ss:$16 sps:$4 sm:$0xff] (!%p233_p2)   ;;  %v2112_v3 = vld [vmem:[%s3082_s3 + $0x200] ss:$16 sps:$4 sm:$0xff] (!%p233_p2)  }
   0x7   : > { %1122 = vmatpush1.bf16.msra.mxu1 (!%p233_p2), %v2109_v1  ;;  %v2113_v4 = vld [vmem:[%s3082_s3 + $0x24] ss:$16 sps:$4 sm:$0xff] (!%p233_p2)   ;;  %v2115_v5 = vld [vmem:[%s3082_s3 + $0x20] ss:$16 sps:$4 sm:$0xff] (!%p233_p2)   ;;  %1164 = vmatprep.subr.bf16.mxu0 (!%p233_p2), %v2110_v2  ;;  %vm312_vm1 = vsmask.f32 (!%p233_p2), 7424 }
   0x8   : > { %v2116_v6 = vld [vmem:[%s3082_s3 + $0x224] ss:$16 sps:$4 sm:$0xff] (!%p233_p2)   ;;  %1165 = vmatpush1.bf16.msra.mxu0 (!%p233_p2), %v2112_v3  ;;  %1123 = vmatprep.subr.bf16.mxu1 (!%p233_p2), %v2113_v4  ;;  %v2118_v7 = vld [vmem:[%s3082_s3 + $0x220] ss:$16 sps:$4 sm:$0xff] (!%p233_p2)  }
   0x9   : > { %1166 = vmatprep.subr.bf16.mxu0 (!%p233_p2), %v2116_v6  ;;  %v2119_v8 = vld [vmem:[%s3082_s3 + $0x44] ss:$16 sps:$4 sm:$0xff] (!%p233_p2)   ;;  %v2121_v9 = vld [vmem:[%s3082_s3 + $0x40] ss:$16 sps:$4 sm:$0xff] (!%p233_p2)  }
   0xa   : > { %v2122_v10 = vld [vmem:[%s3082_s3 + $0x244] ss:$16 sps:$4 sm:$0xff] (!%p233_p2)   ;;  %v2124_v12 = vld [vmem:[%s3082_s3 + $0x240] ss:$16 sps:$4 sm:$0xff] (!%p233_p2)  }
   0xb   : > { %1124 = vmatpush1.bf16.msra.mxu1 (!%p233_p2), %v2115_v5  ;;  %v2125_v11 = vld [vmem:[%s3082_s3 + $0x64] ss:$16 sps:$4 sm:$0xff] (!%p233_p2)   ;;  %v2127_v14 = vld [vmem:[%s3082_s3 + $0x60] ss:$16 sps:$4 sm:$0xff] (!%p233_p2)  }
   0xc   : > { %1125 = vmatprep.subr.bf16.mxu1 (!%p233_p2), %v2119_v8  ;;  %1167 = vmatpush1.bf16.msra.mxu0 (!%p233_p2), %v2118_v7  ;;  %v2128_v13 = vld [vmem:[%s3082_s3 + $0x264] ss:$16 sps:$4 sm:$0xff] (!%p233_p2)   ;;  %v2130_v16 = vld [vmem:[%s3082_s3 + $0x260] ss:$16 sps:$4 sm:$0xff] (!%p233_p2)   ;;  %v2207_v8 = vld [vmem:[%s3082_s3 + $0xc] ss:$16 sps:$4 sm:$0xff] (!%p233_p2)  }
   0xd   : > { %1168 = vmatprep.subr.bf16.mxu0 %v2122_v10  ;;  %v2131_v15 = vld [vmem:[%s3082_s3 + $0x84] ss:$16 sps:$4 sm:$0xff]   ;;  %v2133_v18 = vld [vmem:[%s3082_s3 + $0x80] ss:$16 sps:$4 sm:$0xff]   ;;  %s3087_s22 = smov (!%p272_p3, %s1866_s22), 1 }
   0xe   : > { %v2134_v17 = vld [vmem:[%s3082_s3 + $0x284] ss:$16 sps:$4 sm:$0xff]   ;;  %v2136_v20 = vld [vmem:[%s3082_s3 + $0x280] ss:$16 sps:$4 sm:$0xff]   ;;  %s2098_s13 = smul.u32 12, %s3087_s22  ;;  %s2075_s20 = sshll.u32 %s3087_s22, 3 }
   0xf   : > { %1126 = vmatpush1.bf16.msra.mxu1 %v2121_v9  ;;  %v2137_v19 = vld [vmem:[%s3082_s3 + $0xa4] ss:$16 sps:$4 sm:$0xff]   ;;  %v2139_v22 = vld [vmem:[%s3082_s3 + $0xa0] ss:$16 sps:$4 sm:$0xff]   ;;  %s2601_s10 = scalar_lea.vmem %s3079_s0, %s2075_s20  ;;  %s2076_s20 = sshll.u32 %s3087_s22, 5 }
  0x10   : > { %1127 = vmatprep.subr.bf16.mxu1 %v2125_v11  ;;  %1169 = vmatpush1.bf16.msra.mxu0 %v2124_v12  ;;  %v2140_v21 = vld [vmem:[%s3082_s3 + $0x2a4] ss:$16 sps:$4 sm:$0xff]   ;;  %v2142_v24 = vld [vmem:[%s3082_s3 + $0x2a0] ss:$16 sps:$4 sm:$0xff]   ;;  %s281_s27 = scalar_lea.vmem %s3080_s1, %s2098_s13  ;;  %s286_s25 = scalar_lea.vmem %s3081_s2, %s2076_s20 }
  0x11   : > { %1170 = vmatprep.subr.bf16.mxu0 %v2128_v13  ;;  %v2143_v23 = vld [vmem:[%s3082_s3 + $0xc4] ss:$16 sps:$4 sm:$0xff]   ;;  %v2145_v26 = vld [vmem:[%s3082_s3 + $0xc0] ss:$16 sps:$4 sm:$0xff]   ;;  %v2205_v13 = vld [vmem:[%s3082_s3 + $0x8] ss:$16 sps:$4 sm:$0xff]   ;;  %s291_s28 = scalar_lea.vmem %s3085_s6, %s2076_s20 }
  0x12   : > { %v2146_v25 = vld [vmem:[%s3082_s3 + $0x2c4] ss:$16 sps:$4 sm:$0xff]   ;;  %v2148_v28 = vld [vmem:[%s3082_s3 + $0x2c0] ss:$16 sps:$4 sm:$0xff]  }
  0x13   : > { %1128 = vmatpush1.bf16.msra.mxu1 %v2127_v14  ;;  %v2149_v27 = vld [vmem:[%s3082_s3 + $0xe4] ss:$16 sps:$4 sm:$0xff]   ;;  %v2151_v30 = vld [vmem:[%s3082_s3 + $0xe0] ss:$16 sps:$4 sm:$0xff]   ;;  %v2211_v14 = vld [vmem:[%s3082_s3 + $0x2c] ss:$16 sps:$4 sm:$0xff]  }
  0x14   : > { %1129 = vmatprep.subr.bf16.mxu1 %v2131_v15  ;;  %1171 = vmatpush1.bf16.msra.mxu0 %v2130_v16  ;;  %v2152_v29 = vld [vmem:[%s3082_s3 + $0x2e4] ss:$16 sps:$4 sm:$0xff]   ;;  %v2154_v32 = vld [vmem:[%s3082_s3 + $0x2e0] ss:$16 sps:$4 sm:$0xff]   ;;  %v2209_v16 = vld [vmem:[%s3082_s3 + $0x28] ss:$16 sps:$4 sm:$0xff]  }
  0x15   : > { %1172 = vmatprep.subr.bf16.mxu0 %v2134_v17  ;;  %v2155_v31 = vld [vmem:[%s3082_s3 + $0x104] ss:$16 sps:$4 sm:$0xff]   ;;  %v2157_v34 = vld [vmem:[%s3082_s3 + $0x100] ss:$16 sps:$4 sm:$0xff]   ;;  %v2214_v17 = vld [vmem:[%s3082_s3 + $0x4c] ss:$16 sps:$4 sm:$0xff]  }
  0x16   : > { %v2158_v33 = vld [vmem:[%s3082_s3 + $0x304] ss:$16 sps:$4 sm:$0xff]   ;;  %v2160_v36 = vld [vmem:[%s3082_s3 + $0x300] ss:$16 sps:$4 sm:$0xff]  }
  0x17   : > { %1130 = vmatpush1.bf16.msra.mxu1 %v2133_v18  ;;  %v2161_v35 = vld [vmem:[%s3082_s3 + $0x124] ss:$16 sps:$4 sm:$0xff]   ;;  %v2163_v38 = vld [vmem:[%s3082_s3 + $0x120] ss:$16 sps:$4 sm:$0xff]   ;;  %v2212_v18 = vld [vmem:[%s3082_s3 + $0x48] ss:$16 sps:$4 sm:$0xff]  }
  0x18   : > { %1131 = vmatprep.subr.bf16.mxu1 %v2137_v19  ;;  %1173 = vmatpush1.bf16.msra.mxu0 %v2136_v20  ;;  %v2164_v37 = vld [vmem:[%s3082_s3 + $0x324] ss:$16 sps:$4 sm:$0xff]   ;;  %v2166_v40 = vld [vmem:[%s3082_s3 + $0x320] ss:$16 sps:$4 sm:$0xff]   ;;  %v2217_v19 = vld [vmem:[%s3082_s3 + $0x6c] ss:$16 sps:$4 sm:$0xff]  }
  0x19   : > { %1174 = vmatprep.subr.bf16.mxu0 %v2140_v21  ;;  %v2167_v39 = vld [vmem:[%s3082_s3 + $0x144] ss:$16 sps:$4 sm:$0xff]   ;;  %v2169_v42 = vld [vmem:[%s3082_s3 + $0x140] ss:$16 sps:$4 sm:$0xff]   ;;  %v2215_v20 = vld [vmem:[%s3082_s3 + $0x68] ss:$16 sps:$4 sm:$0xff]  }
  0x1a   : > { %v2170_v41 = vld [vmem:[%s3082_s3 + $0x344] ss:$16 sps:$4 sm:$0xff]   ;;  %v2172_v44 = vld [vmem:[%s3082_s3 + $0x340] ss:$16 sps:$4 sm:$0xff]   ;;  %v2220_v21 = vld [vmem:[%s3082_s3 + $0x8c] ss:$16 sps:$4 sm:$0xff]  }
  0x1b   : > { %1132 = vmatpush1.bf16.msra.mxu1 %v2139_v22  ;;  %v2173_v43 = vld [vmem:[%s3082_s3 + $0x164] ss:$16 sps:$4 sm:$0xff]   ;;  %v2175_v46 = vld [vmem:[%s3082_s3 + $0x160] ss:$16 sps:$4 sm:$0xff]   ;;  %v2218_v22 = vld [vmem:[%s3082_s3 + $0x88] ss:$16 sps:$4 sm:$0xff]  }
  0x1c   : > { %1133 = vmatprep.subr.bf16.mxu1 %v2143_v23  ;;  %1175 = vmatpush1.bf16.msra.mxu0 %v2142_v24  ;;  %v2176_v45 = vld [vmem:[%s3082_s3 + $0x364] ss:$16 sps:$4 sm:$0xff]   ;;  %v2178_v49 = vld [vmem:[%s3082_s3 + $0x360] ss:$16 sps:$4 sm:$0xff]   ;;  %v2223_v23 = vld [vmem:[%s3082_s3 + $0xac] ss:$16 sps:$4 sm:$0xff]  }
  0x1d   : > { %1176 = vmatprep.subr.bf16.mxu0 %v2146_v25  ;;  %v2202_v47 = vld [vmem:[%s281_s27] sm:$0xff]   ;;  %v2208_v51 = vld [vmem:[%s281_s27 + $0x8] ss:$0 sps:$4 sm:$0x11]   ;;  %v2226_v25 = vld [vmem:[%s3082_s3 + $0xcc] ss:$16 sps:$4 sm:$0xff]  }
  0x1e   : > { %v2179_v48 = vld [vmem:[%s3082_s3 + $0x184] ss:$16 sps:$4 sm:$0xff]   ;;  %1153 = vmatprep.mubr.bf16.mxu1 %v2202_v47  ;;  %v327_v52 = vrot.slane %v2202_v47, 1  ;;  %v2181_v53 = vld [vmem:[%s3082_s3 + $0x180] ss:$16 sps:$4 sm:$0xff]   ;;  %v328_v55 = vrot.slane %v2208_v51, 1 }
  0x1f   : > { %1134 = vmatpush1.bf16.msra.mxu1 %v2145_v26  ;;  %v2182_v50 = vld [vmem:[%s3082_s3 + $0x384] ss:$16 sps:$4 sm:$0xff]   ;;  %v2184_v56 = vld [vmem:[%s3082_s3 + $0x380] ss:$16 sps:$4 sm:$0xff]   ;;  %v316_v62 = vshll.u32 %v2202_v47, 16  ;;  %v314_v3 = vshrl.u32 %v2202_v47, 16 }
  0x20   : > { %1135 = vmatprep.subr.bf16.mxu1 %v2149_v27  ;;  %1177 = vmatpush1.bf16.msra.mxu0 %v2148_v28  ;;  %v2185_v54 = vld [vmem:[%s3082_s3 + $0x1a4] ss:$16 sps:$4 sm:$0xff]   ;;  %v2627_v58 = vsel %vm326_vm0, %v327_v52, %v328_v55  ;;  %v2187_v59 = vld [vmem:[%s3082_s3 + $0x1a0] ss:$16 sps:$4 sm:$0xff]   ;;  %v321_v5 = vshll.u32 %v2208_v51, 16 }
  0x21   : > { %1178 = vmatprep.subr.bf16.mxu0 %v2152_v29  ;;  %v2188_v57 = vld [vmem:[%s3082_s3 + $0x3a4] ss:$16 sps:$4 sm:$0xff]   ;;  %1196 = vmatprep.mubr.bf16.mxu0 %v2627_v58  ;;  %v2190_v61 = vld [vmem:[%s3082_s3 + $0x3a0] ss:$16 sps:$4 sm:$0xff]   ;;  %v318_v4 = vrot.slane %v316_v62, 1 }
  0x22   : > { %v2191_v60 = vld [vmem:[%s3082_s3 + $0x1c4] ss:$16 sps:$4 sm:$0xff]   ;;  %v2193_v0 = vld [vmem:[%s3082_s3 + $0x1c0] ss:$16 sps:$4 sm:$0xff]   ;;  %v323_v11 = vrot.slane %v321_v5, 1 }
  0x23   : > { %1136 = vmatpush1.bf16.msra.mxu1 %v2151_v30  ;;  %v2194_v63 = vld [vmem:[%s3082_s3 + $0x3c4] ss:$16 sps:$4 sm:$0xff]   ;;  %v2196_v2 = vld [vmem:[%s3082_s3 + $0x3c0] ss:$16 sps:$4 sm:$0xff]   ;;  %v319_v10 = vor.u32 %v318_v4, %v314_v3  ;;  %v2221_v24 = vld [vmem:[%s3082_s3 + $0xa8] ss:$16 sps:$4 sm:$0xff]  }
  0x24   : > { %1137 = vmatprep.subr.bf16.mxu1 %v2155_v31  ;;  %1179 = vmatpush1.bf16.msra.mxu0 %v2154_v32  ;;  %v2197_v1 = vld [vmem:[%s3082_s3 + $0x1e4] ss:$16 sps:$4 sm:$0xff]   ;;  %v2199_v7 = vld [vmem:[%s3082_s3 + $0x1e0] ss:$16 sps:$4 sm:$0xff]   ;;  %v2224_v26 = vld [vmem:[%s3082_s3 + $0xc8] ss:$16 sps:$4 sm:$0xff]  }
  0x25   : > { %1180 = vmatprep.subr.bf16.mxu0 %v2158_v33  ;;  %v2200_v6 = vld [vmem:[%s3082_s3 + $0x3e4] ss:$16 sps:$4 sm:$0xff]   ;;  %v2203_v9 = vld [vmem:[%s3082_s3 + $0x3e0] ss:$16 sps:$4 sm:$0xff]   ;;  %v2672_v15 = vsel %vm312_vm1, %v319_v10, %v323_v11  ;;  %v2229_v27 = vld [vmem:[%s3082_s3 + $0xec] ss:$16 sps:$4 sm:$0xff]  }
  0x26   : > { %v2664_v12 = vld [vmem:[%s2601_s10] sm:$0xff]   ;;  %v2227_v30 = vld [vmem:[%s3082_s3 + $0xe8] ss:$16 sps:$4 sm:$0xff]   ;;  %v2307_v31 = vld [vmem:[%s3084_s5 + $0x14] ss:$8 sps:$4 sm:$0xff]  }
  0x27   : > { %1138 = vmatpush1.bf16.msra.mxu1 %v2157_v34  ;;  %v2302_v28 = vld [vmem:[%s3084_s5] ss:$8 sps:$4 sm:$0xff]   ;;  %v2304_v29 = vld [vmem:[%s3084_s5 + $0x4] ss:$8 sps:$4 sm:$0xff]   ;;  %v2305_v33 = vld [vmem:[%s3084_s5 + $0x10] ss:$8 sps:$4 sm:$0xff]  }
  0x28   : > { %1139 = vmatprep.subr.bf16.mxu1 %v2161_v35  ;;  %1181 = vmatpush1.bf16.msra.mxu0 %v2160_v36  ;;  %v2232_v32 = vld [vmem:[%s3082_s3 + $0x10c] ss:$16 sps:$4 sm:$0xff]   ;;  %v2230_v35 = vld [vmem:[%s3082_s3 + $0x108] ss:$16 sps:$4 sm:$0xff]  }
  0x29   : > { %1182 = vmatprep.subr.bf16.mxu0 %v2164_v37  ;;  %v2310_v34 = vld [vmem:[%s3084_s5 + $0x24] ss:$8 sps:$4 sm:$0xff]   ;;  %v2308_v37 = vld [vmem:[%s3084_s5 + $0x20] ss:$8 sps:$4 sm:$0xff]   ;;  %v2335_v10 = vld [vmem:[%s3084_s5 + $0xb0] ss:$8 sps:$4 sm:$0xff]  }
  0x2a   : > { %v2235_v36 = vld [vmem:[%s3082_s3 + $0x12c] ss:$16 sps:$4 sm:$0xff]   ;;  %v2242_v51 = vld [vmem:[%s3082_s3 + $0x188] ss:$16 sps:$4 sm:$0xff]  }
  0x2b   : > { %1140 = vmatpush1.bf16.msra.mxu1 %v2163_v38  ;;  %v2313_v38 = vld [vmem:[%s3084_s5 + $0x34] ss:$8 sps:$4 sm:$0xff]   ;;  %v2245_v55 = vld [vmem:[%s3082_s3 + $0x1a8] ss:$16 sps:$4 sm:$0xff]   ;;  %v2334_v3 = vld [vmem:[%s3084_s5 + $0xa4] ss:$8 sps:$4 sm:$0xff]  }
  0x2c   : > { %1141 = vmatprep.subr.bf16.mxu1 %v2167_v39  ;;  %1183 = vmatpush1.bf16.msra.mxu0 %v2166_v40  ;;  %v2233_v39 = vld [vmem:[%s3082_s3 + $0x128] ss:$16 sps:$4 sm:$0xff]   ;;  %v2238_v40 = vld [vmem:[%s3082_s3 + $0x14c] ss:$16 sps:$4 sm:$0xff]  }
  0x2d   : > { %1184 = vmatprep.subr.bf16.mxu0 %v2170_v41  ;;  %v2311_v41 = vld [vmem:[%s3084_s5 + $0x30] ss:$8 sps:$4 sm:$0xff]   ;;  %v2247_v52 = vld [vmem:[%s3082_s3 + $0x1ac] ss:$16 sps:$4 sm:$0xff]   ;;  %v2326_v62 = vld [vmem:[%s3084_s5 + $0x80] ss:$8 sps:$4 sm:$0xff]  }
  0x2e   : > { %v2254_v4 = vld [vmem:[%s3082_s3 + $0x208] ss:$16 sps:$4 sm:$0xff]   ;;  %v2259_v5 = vld [vmem:[%s3082_s3 + $0x22c] ss:$16 sps:$4 sm:$0xff]  }
  0x2f   : > { %1142 = vmatpush1.bf16.msra.mxu1 %v2169_v42  ;;  %v2316_v42 = vld [vmem:[%s3084_s5 + $0x44] ss:$8 sps:$4 sm:$0xff]  }
  0x30   : > { %1143 = vmatprep.subr.bf16.mxu1 %v2173_v43  ;;  %1185 = vmatpush1.bf16.msra.mxu0 %v2172_v44  ;;  %v2236_v43 = vld [vmem:[%s3082_s3 + $0x148] ss:$16 sps:$4 sm:$0xff]   ;;  %v2241_v44 = vld [vmem:[%s3082_s3 + $0x16c] ss:$16 sps:$4 sm:$0xff]  }
  0x31   : > { %1186 = vmatprep.subr.bf16.mxu0 %v2176_v45  ;;  %v2314_v45 = vld [vmem:[%s3084_s5 + $0x40] ss:$8 sps:$4 sm:$0xff]   ;;  %v2340_v11 = vld [vmem:[%s3084_s5 + $0xc4] ss:$8 sps:$4 sm:$0xff]  }
  0x33   : > { %1144 = vmatpush1.bf16.msra.mxu1 %v2175_v46  ;;  %v2239_v46 = vld [vmem:[%s3082_s3 + $0x168] ss:$16 sps:$4 sm:$0xff]  }
  0x34   : > { %1145 = vmatprep.subr.bf16.mxu1 %v2179_v48  ;;  %1187 = vmatpush1.bf16.msra.mxu0 %v2178_v49  ;;  %v2244_v48 = vld [vmem:[%s3082_s3 + $0x18c] ss:$16 sps:$4 sm:$0xff]   ;;  %v2317_v49 = vld [vmem:[%s3084_s5 + $0x50] ss:$8 sps:$4 sm:$0xff]  }
  0x35   : > { %1188 = vmatprep.subr.bf16.mxu0 %v2182_v50  ;;  %v2322_v50 = vld [vmem:[%s3084_s5 + $0x64] ss:$8 sps:$4 sm:$0xff]  }
  0x37   : > { %1146 = vmatpush1.bf16.msra.mxu1 %v2181_v53  ;;  %v2320_v53 = vld [vmem:[%s3084_s5 + $0x60] ss:$8 sps:$4 sm:$0xff]  }
  0x38   : > { %1147 = vmatprep.subr.bf16.mxu1 %v2185_v54  ;;  %1189 = vmatpush1.bf16.msra.mxu0 %v2184_v56  ;;  %v2325_v54 = vld [vmem:[%s3084_s5 + $0x74] ss:$8 sps:$4 sm:$0xff]  }
  0x39   : > { %1190 = vmatprep.subr.bf16.mxu0 %v2188_v57  ;;  %v2250_v56 = vld [vmem:[%s3082_s3 + $0x1cc] ss:$16 sps:$4 sm:$0xff]   ;;  %v2323_v57 = vld [vmem:[%s3084_s5 + $0x70] ss:$8 sps:$4 sm:$0xff]  }
  0x3b   : > { %1148 = vmatpush1.bf16.msra.mxu1 %v2187_v59  ;;  %v2328_v59 = vld [vmem:[%s3084_s5 + $0x84] ss:$8 sps:$4 sm:$0xff]  }
  0x3c   : > { %1149 = vmatprep.subr.bf16.mxu1 %v2191_v60  ;;  %1191 = vmatpush1.bf16.msra.mxu0 %v2190_v61  ;;  %v2248_v60 = vld [vmem:[%s3082_s3 + $0x1c8] ss:$16 sps:$4 sm:$0xff]   ;;  %v2253_v61 = vld [vmem:[%s3082_s3 + $0x1ec] ss:$16 sps:$4 sm:$0xff]  }
  0x3d   : > { %1192 = vmatprep.subr.bf16.mxu0 %v2194_v63  ;;  %v2331_v63 = vld [vmem:[%s3084_s5 + $0x94] ss:$8 sps:$4 sm:$0xff]  }
  0x3f   : > { %1150 = vmatpush1.bf16.msra.mxu1 %v2193_v0  ;;  %v2251_v0 = vld [vmem:[%s3082_s3 + $0x1e8] ss:$16 sps:$4 sm:$0xff]  }
  0x40   : > { %1151 = vmatprep.subr.bf16.mxu1 %v2197_v1  ;;  %1193 = vmatpush1.bf16.msra.mxu0 %v2196_v2  ;;  %v2256_v1 = vld [vmem:[%s3082_s3 + $0x20c] ss:$16 sps:$4 sm:$0xff]   ;;  %v2329_v2 = vld [vmem:[%s3084_s5 + $0x90] ss:$8 sps:$4 sm:$0xff]  }
  0x41   : > { %1194 = vmatprep.subr.bf16.mxu0 %v2200_v6  ;;  %v2332_v6 = vld [vmem:[%s3084_s5 + $0xa0] ss:$8 sps:$4 sm:$0xff]  }
  0x43   : > { %1152 = vmatpush1.bf16.msra.mxu1 %v2199_v7  ;;  %v2337_v7 = vld [vmem:[%s3084_s5 + $0xb4] ss:$8 sps:$4 sm:$0xff]  }
  0x44   : > { %1207 = vmatprep.subr.bf16.mxu1 %v2207_v8  ;;  %1195 = vmatpush1.bf16.msra.mxu0 %v2203_v9  ;;  %v2257_v8 = vld [vmem:[%s3082_s3 + $0x228] ss:$16 sps:$4 sm:$0xff]   ;;  %v2262_v9 = vld [vmem:[%s3082_s3 + $0x24c] ss:$16 sps:$4 sm:$0xff]  }
  0x45   : > { %1689 = vmatprep.subr.bf16.mxu0 %v2304_v29  ;;  %v2349_v29 = vld [vmem:[%s3084_s5 + $0xf4] ss:$8 sps:$4 sm:$0xff]  }
  0x46   : > { %1154 = vmatmul.mubr.bf16.vlgmr.msra.gmra.mrb[0].mxu1 %v2664_v12 }
  0x47   : > { %1208 = vmatpush1.bf16.msra.mxu1 %v2205_v13  ;;  %1239 = vmatprep.mubr.bf16.mxu1 %v2202_v47  ;;  %v2319_v47 = vld [vmem:[%s3084_s5 + $0x54] ss:$8 sps:$4 sm:$0xff]   ;;  %v2338_v13 = vld [vmem:[%s3084_s5 + $0xc0] ss:$8 sps:$4 sm:$0xff]  }
  0x48   : > { %1197 = vmatmul.mubr.bf16.vlgmr.msra.gmra.mrb[0].mxu0 %v2672_v15  ;;  %1209 = vmatprep.subr.bf16.mxu1 %v2211_v14  ;;  %v2263_v14 = vld [vmem:[%s3082_s3 + $0x268] ss:$16 sps:$4 sm:$0xff]  }
  0x49   : > { %1690 = vmatpush1.bf16.msra.mxu0 %v2302_v28  ;;  %v2280_v28 = vld [vmem:[%s3082_s3 + $0x30c] ss:$16 sps:$4 sm:$0xff]  }
  0x4a   : > { %1691 = vmatprep.subr.bf16.mxu0 %v2307_v31  ;;  %v2278_v31 = vld [vmem:[%s3082_s3 + $0x308] ss:$16 sps:$4 sm:$0xff]  }
  0x4b   : > { %1210 = vmatpush1.bf16.msra.mxu1 %v2209_v16  ;;  %v2268_v16 = vld [vmem:[%s3082_s3 + $0x28c] ss:$16 sps:$4 sm:$0xff]  }
  0x4c   : > { %1211 = vmatprep.subr.bf16.mxu1 %v2214_v17  ;;  %v2266_v17 = vld [vmem:[%s3082_s3 + $0x288] ss:$16 sps:$4 sm:$0xff]  }
  0x4d   : > { %1692 = vmatpush1.bf16.msra.mxu0 %v2305_v33  ;;  %v2352_v33 = vld [vmem:[%s3084_s5 + $0x104] ss:$8 sps:$4 sm:$0xff]  }
  0x4e   : > { %1693 = vmatprep.subr.bf16.mxu0 %v2310_v34  ;;  %v2281_v34 = vld [vmem:[%s3082_s3 + $0x328] ss:$16 sps:$4 sm:$0xff]  }
  0x4f   : > { %1212 = vmatpush1.bf16.msra.mxu1 %v2212_v18  ;;  %v2271_v18 = vld [vmem:[%s3082_s3 + $0x2ac] ss:$16 sps:$4 sm:$0xff]  }
  0x50   : > { %1213 = vmatprep.subr.bf16.mxu1 %v2217_v19  ;;  %v2269_v19 = vld [vmem:[%s3082_s3 + $0x2a8] ss:$16 sps:$4 sm:$0xff]  }
  0x51   : > { %1694 = vmatpush1.bf16.msra.mxu0 %v2308_v37  ;;  %v2289_v37 = vld [vmem:[%s3082_s3 + $0x36c] ss:$16 sps:$4 sm:$0xff]  }
  0x52   : > { %1695 = vmatprep.subr.bf16.mxu0 %v2313_v38  ;;  %v2287_v38 = vld [vmem:[%s3082_s3 + $0x368] ss:$16 sps:$4 sm:$0xff]  }
  0x53   : > { %1214 = vmatpush1.bf16.msra.mxu1 %v2215_v20  ;;  %v2274_v20 = vld [vmem:[%s3082_s3 + $0x2cc] ss:$16 sps:$4 sm:$0xff]  }
  0x54   : > { %1215 = vmatprep.subr.bf16.mxu1 %v2220_v21  ;;  %v2343_v21 = vld [vmem:[%s3084_s5 + $0xd4] ss:$8 sps:$4 sm:$0xff]  }
  0x55   : > { %1696 = vmatpush1.bf16.msra.mxu0 %v2311_v41  ;;  %v2295_v41 = vld [vmem:[%s3082_s3 + $0x3ac] ss:$16 sps:$4 sm:$0xff]  }
  0x56   : > { %1697 = vmatprep.subr.bf16.mxu0 %v2316_v42  ;;  %v2293_v42 = vld [vmem:[%s3082_s3 + $0x3a8] ss:$16 sps:$4 sm:$0xff]  }
  0x57   : > { %1216 = vmatpush1.bf16.msra.mxu1 %v2218_v22  ;;  %v2341_v22 = vld [vmem:[%s3084_s5 + $0xd0] ss:$8 sps:$4 sm:$0xff]  }
  0x58   : > { %1217 = vmatprep.subr.bf16.mxu1 %v2223_v23  ;;  %v2272_v23 = vld [vmem:[%s3082_s3 + $0x2c8] ss:$16 sps:$4 sm:$0xff]  }
  0x59   : > { %1698 = vmatpush1.bf16.msra.mxu0 %v2314_v45  ;;  %v2301_v45 = vld [vmem:[%s3082_s3 + $0x3ec] ss:$16 sps:$4 sm:$0xff]  }
  0x5a   : > { %1699 = vmatprep.subr.bf16.mxu0 %v2319_v47  ;;  %v461_v47 = vlaneseq }
  0x5b   : > { %1218 = vmatpush1.bf16.msra.mxu1 %v2221_v24  ;;  %v2277_v24 = vld [vmem:[%s3082_s3 + $0x2ec] ss:$16 sps:$4 sm:$0xff]  }
  0x5c   : > { %1219 = vmatprep.subr.bf16.mxu1 %v2226_v25  ;;  %v2346_v25 = vld [vmem:[%s3084_s5 + $0xe4] ss:$8 sps:$4 sm:$0xff]  }
  0x5d   : > { %1700 = vmatpush1.bf16.msra.mxu0 %v2317_v49 }
  0x5e   : > { %1701 = vmatprep.subr.bf16.mxu0 %v2322_v50  ;;  %v2967_v50 = vld [vmem:[%s3083_s4] sm:$0xf] }
  0x5f   : > { %1220 = vmatpush1.bf16.msra.mxu1 %v2224_v26  ;;  %v2344_v26 = vld [vmem:[%s3084_s5 + $0xe0] ss:$8 sps:$4 sm:$0xff]  }
  0x60   : > { %1221 = vmatprep.subr.bf16.mxu1 %v2229_v27  ;;  %v2275_v27 = vld [vmem:[%s3082_s3 + $0x2e8] ss:$16 sps:$4 sm:$0xff]  }
  0x61   : > { %1702 = vmatpush1.bf16.msra.mxu0 %v2320_v53 }
  0x62   : > { %1703 = vmatprep.subr.bf16.mxu0 %v2325_v54 }
  0x63   : > { %1222 = vmatpush1.bf16.msra.mxu1 %v2227_v30  ;;  %v2347_v30 = vld [vmem:[%s3084_s5 + $0xf0] ss:$8 sps:$4 sm:$0xff]  }
  0x64   : > { %1223 = vmatprep.subr.bf16.mxu1 %v2232_v32  ;;  %v2283_v32 = vld [vmem:[%s3082_s3 + $0x32c] ss:$16 sps:$4 sm:$0xff]  }
  0x65   : > { %1704 = vmatpush1.bf16.msra.mxu0 %v2323_v57 }
  0x66   : > { %1705 = vmatprep.subr.bf16.mxu0 %v2328_v59 }
  0x67   : > { %1224 = vmatpush1.bf16.msra.mxu1 %v2230_v35  ;;  %v2286_v35 = vld [vmem:[%s3082_s3 + $0x34c] ss:$16 sps:$4 sm:$0xff]  }
  0x68   : > { %1225 = vmatprep.subr.bf16.mxu1 %v2235_v36  ;;  %v2284_v36 = vld [vmem:[%s3082_s3 + $0x348] ss:$16 sps:$4 sm:$0xff]  }
  0x69   : > { %1706 = vmatpush1.bf16.msra.mxu0 %v2326_v62 }
  0x6a   : > { %1707 = vmatprep.subr.bf16.mxu0 %v2331_v63 }
  0x6b   : > { %1226 = vmatpush1.bf16.msra.mxu1 %v2233_v39  ;;  %v2292_v39 = vld [vmem:[%s3082_s3 + $0x38c] ss:$16 sps:$4 sm:$0xff]  }
  0x6c   : > { %1227 = vmatprep.subr.bf16.mxu1 %v2238_v40  ;;  %v2290_v40 = vld [vmem:[%s3082_s3 + $0x388] ss:$16 sps:$4 sm:$0xff]  }
  0x6d   : > { %1708 = vmatpush1.bf16.msra.mxu0 %v2329_v2 }
  0x6e   : > { %1709 = vmatprep.subr.bf16.mxu0 %v2334_v3 }
  0x6f   : > { %1228 = vmatpush1.bf16.msra.mxu1 %v2236_v43  ;;  %v2298_v43 = vld [vmem:[%s3082_s3 + $0x3cc] ss:$16 sps:$4 sm:$0xff]  }
  0x70   : > { %1229 = vmatprep.subr.bf16.mxu1 %v2241_v44  ;;  %v2296_v44 = vld [vmem:[%s3082_s3 + $0x3c8] ss:$16 sps:$4 sm:$0xff]  }
  0x71   : > { %1710 = vmatpush1.bf16.msra.mxu0 %v2332_v6 }
  0x72   : > { %1711 = vmatprep.subr.bf16.mxu0 %v2337_v7 }
  0x73   : > { %1230 = vmatpush1.bf16.msra.mxu1 %v2239_v46  ;;  %v2299_v46 = vld [vmem:[%s3082_s3 + $0x3e8] ss:$16 sps:$4 sm:$0xff]  }
  0x74   : > { %1231 = vmatprep.subr.bf16.mxu1 %v2244_v48  ;;  %v2961_v48 = vshrl.u32 %v461_v47, 7 }
  0x75   : > { %1712 = vmatpush1.bf16.msra.mxu0 %v2335_v10 }
  0x76   : > { %1713 = vmatprep.subr.bf16.mxu0 %v2340_v11  ;;  %v463_v49 = vsub.s32 0, %v2961_v48 }
  0x77   : > { %1232 = vmatpush1.bf16.msra.mxu1 %v2242_v51  ;;  %v467_v51 = vsub.s32 1, %v2961_v48 }
  0x78   : > { %1233 = vmatprep.subr.bf16.mxu1 %v2247_v52  ;;  %v464_v52 = vrot.slane %v2967_v50, %v463_v49 }
  0x79   : > { %1714 = vmatpush1.bf16.msra.mxu0 %v2338_v13  ;;  %v468_v53 = vrot.slane %v2967_v50, %v467_v51  ;;  %v2353_v13 = vld [vmem:[%s3084_s5 + $0x110] ss:$8 sps:$4 sm:$0xff]  }
  0x7a   : > { %1715 = vmatprep.subr.bf16.mxu0 %v2343_v21  ;;  %v2367_v21 = vld [vmem:[%s3084_s5 + $0x154] ss:$8 sps:$4 sm:$0xff]  }
  0x7b   : > { %1234 = vmatpush1.bf16.msra.mxu1 %v2245_v55 }
  0x7c   : > { %1235 = vmatprep.subr.bf16.mxu1 %v2250_v56 }
  0x7d   : > { %1716 = vmatpush1.bf16.msra.mxu0 %v2341_v22  ;;  %v2365_v22 = vld [vmem:[%s3084_s5 + $0x150] ss:$8 sps:$4 sm:$0xff]  }
  0x7e   : > { %1717 = vmatprep.subr.bf16.mxu0 %v2346_v25  ;;  %v2373_v25 = vld [vmem:[%s3084_s5 + $0x174] ss:$8 sps:$4 sm:$0xff]  }
  0x7f   : > { %1236 = vmatpush1.bf16.msra.mxu1 %v2248_v60 }
  0x80   : > { %1237 = vmatprep.subr.bf16.mxu1 %v2253_v61 }
  0x81   : > { %1718 = vmatpush1.bf16.msra.mxu0 %v2344_v26  ;;  %v2371_v26 = vld [vmem:[%s3084_s5 + $0x170] ss:$8 sps:$4 sm:$0xff]  }
  0x82   : > { %1719 = vmatprep.subr.bf16.mxu0 %v2349_v29  ;;  %v2379_v29 = vld [vmem:[%s3084_s5 + $0x194] ss:$8 sps:$4 sm:$0xff]  }
  0x83   : > { %1238 = vmatpush1.bf16.msra.mxu1 %v2251_v0 }
  0x84   : > { %1250 = vmatprep.subr.bf16.mxu1 %v2256_v1 }
  0x85   : > { %1720 = vmatpush1.bf16.msra.mxu0 %v2347_v30  ;;  %v2377_v30 = vld [vmem:[%s3084_s5 + $0x190] ss:$8 sps:$4 sm:$0xff]  }
  0x86   : > { %1240 = vmatmul.mubr.bf16.vlgmr.msra.gmra.mrb[4].mxu1 %v2664_v12  ;;  %v2265_v12 = vld [vmem:[%s3082_s3 + $0x26c] ss:$16 sps:$4 sm:$0xff]   ;;  %1732 = vmatprep.subr.bf16.mxu0 %v2352_v33 }
  0x87   : > { %1251 = vmatpush1.bf16.msra.mxu1 %v2254_v4  ;;  %1282 = vmatprep.mubr.bf16.mxu1 %v2627_v58  ;;  %v2260_v58 = vld [vmem:[%s3082_s3 + $0x248] ss:$16 sps:$4 sm:$0xff]   ;;  %v2385_v33 = vld [vmem:[%s3084_s5 + $0x1b4] ss:$8 sps:$4 sm:$0xff]  }
  0x88   : > { %1252 = vmatprep.subr.bf16.mxu1 %v2259_v5 }
  0x8b   : > { %1253 = vmatpush1.bf16.msra.mxu1 %v2257_v8 }
  0x8c   : > { %1254 = vmatprep.subr.bf16.mxu1 %v2262_v9 }
  0x8f   : > { %1255 = vmatpush1.bf16.msra.mxu1 %v2260_v58  ;;  %v2350_v58 = vld [vmem:[%s3084_s5 + $0x100] ss:$8 sps:$4 sm:$0xff]  }
  0x90   : > { %1256 = vmatprep.subr.bf16.mxu1 %v2265_v12  ;;  %v2355_v12 = vld [vmem:[%s3084_s5 + $0x114] ss:$8 sps:$4 sm:$0xff]  }
  0x93   : > { %1257 = vmatpush1.bf16.msra.mxu1 %v2263_v14  ;;  %v2358_v14 = vld [vmem:[%s3084_s5 + $0x124] ss:$8 sps:$4 sm:$0xff]  }
  0x94   : > { %1258 = vmatprep.subr.bf16.mxu1 %v2268_v16  ;;  %v2356_v16 = vld [vmem:[%s3084_s5 + $0x120] ss:$8 sps:$4 sm:$0xff]  }
  0x97   : > { %1259 = vmatpush1.bf16.msra.mxu1 %v2266_v17  ;;  %v2361_v17 = vld [vmem:[%s3084_s5 + $0x134] ss:$8 sps:$4 sm:$0xff]  }
  0x98   : > { %1260 = vmatprep.subr.bf16.mxu1 %v2271_v18  ;;  %v2359_v18 = vld [vmem:[%s3084_s5 + $0x130] ss:$8 sps:$4 sm:$0xff]  }
  0x9b   : > { %1261 = vmatpush1.bf16.msra.mxu1 %v2269_v19  ;;  %v2364_v19 = vld [vmem:[%s3084_s5 + $0x144] ss:$8 sps:$4 sm:$0xff]  }
  0x9c   : > { %1262 = vmatprep.subr.bf16.mxu1 %v2274_v20  ;;  %v2362_v20 = vld [vmem:[%s3084_s5 + $0x140] ss:$8 sps:$4 sm:$0xff]  }
  0x9f   : > { %1263 = vmatpush1.bf16.msra.mxu1 %v2272_v23  ;;  %v2370_v23 = vld [vmem:[%s3084_s5 + $0x164] ss:$8 sps:$4 sm:$0xff]  }
  0xa0   : > { %1264 = vmatprep.subr.bf16.mxu1 %v2277_v24  ;;  %v2368_v24 = vld [vmem:[%s3084_s5 + $0x160] ss:$8 sps:$4 sm:$0xff]  }
  0xa3   : > { %1265 = vmatpush1.bf16.msra.mxu1 %v2275_v27  ;;  %v2376_v27 = vld [vmem:[%s3084_s5 + $0x184] ss:$8 sps:$4 sm:$0xff]  }
  0xa4   : > { %1266 = vmatprep.subr.bf16.mxu1 %v2280_v28  ;;  %v2374_v28 = vld [vmem:[%s3084_s5 + $0x180] ss:$8 sps:$4 sm:$0xff]  }
  0xa7   : > { %1267 = vmatpush1.bf16.msra.mxu1 %v2278_v31  ;;  %v2382_v31 = vld [vmem:[%s3084_s5 + $0x1a4] ss:$8 sps:$4 sm:$0xff]  }
  0xa8   : > { %1268 = vmatprep.subr.bf16.mxu1 %v2283_v32  ;;  %v2380_v32 = vld [vmem:[%s3084_s5 + $0x1a0] ss:$8 sps:$4 sm:$0xff]  }
  0xab   : > { %1269 = vmatpush1.bf16.msra.mxu1 %v2281_v34  ;;  %v2383_v34 = vld [vmem:[%s3084_s5 + $0x1b0] ss:$8 sps:$4 sm:$0xff]  }
  0xac   : > { %1270 = vmatprep.subr.bf16.mxu1 %v2286_v35  ;;  %v2388_v35 = vld [vmem:[%s3084_s5 + $0x1c4] ss:$8 sps:$4 sm:$0xff]  }
  0xaf   : > { %1271 = vmatpush1.bf16.msra.mxu1 %v2284_v36  ;;  %v2386_v36 = vld [vmem:[%s3084_s5 + $0x1c0] ss:$8 sps:$4 sm:$0xff]  }
  0xb0   : > { %1272 = vmatprep.subr.bf16.mxu1 %v2289_v37  ;;  %v2391_v37 = vld [vmem:[%s3084_s5 + $0x1d4] ss:$8 sps:$4 sm:$0xff]  }
  0xb3   : > { %1273 = vmatpush1.bf16.msra.mxu1 %v2287_v38  ;;  %v2389_v38 = vld [vmem:[%s3084_s5 + $0x1d0] ss:$8 sps:$4 sm:$0xff]  }
  0xb4   : > { %1274 = vmatprep.subr.bf16.mxu1 %v2292_v39  ;;  %v2394_v39 = vld [vmem:[%s3084_s5 + $0x1e4] ss:$8 sps:$4 sm:$0xff]  }
  0xb7   : > { %1275 = vmatpush1.bf16.msra.mxu1 %v2290_v40  ;;  %v2392_v40 = vld [vmem:[%s3084_s5 + $0x1e0] ss:$8 sps:$4 sm:$0xff]  }
  0xb8   : > { %1276 = vmatprep.subr.bf16.mxu1 %v2295_v41  ;;  %v2397_v41 = vld [vmem:[%s3084_s5 + $0x1f4] ss:$8 sps:$4 sm:$0xff]  }
  0xbb   : > { %1277 = vmatpush1.bf16.msra.mxu1 %v2293_v42  ;;  %v2395_v42 = vld [vmem:[%s3084_s5 + $0x1f0] ss:$8 sps:$4 sm:$0xff]  }
  0xbc   : > { %1278 = vmatprep.subr.bf16.mxu1 %v2298_v43  ;;  %v471_v43 = vsub.s32 2, %v2961_v48 }
  0xbf   : > { %1279 = vmatpush1.bf16.msra.mxu1 %v2296_v44  ;;  %v475_v44 = vsub.s32 3, %v2961_v48  ;;  %v1775_v48 = vld [vmem:[%s286_s25] sm:$0xff] }
  0xc0   : > { %1280 = vmatprep.subr.bf16.mxu1 %v2301_v45  ;;  %v472_v45 = vrot.slane %v2967_v50, %v471_v43 }
  0xc3   : > { %1281 = vmatpush1.bf16.msra.mxu1 %v2299_v46  ;;  %v476_v46 = vrot.slane %v2967_v50, %v475_v44  ;;  %v1776_v50 = vld [vmem:[%s286_s25 + $0x8] sm:$0xff] }
  0xc6   : > { %1283 = vmatmul.mubr.bf16.vlgmr.msra.gmra.mrb[4].mxu1 %v2672_v15 }
 0x119   : > { %v1155_v54 = vpop.f32.mrb[0].mxu1 }
 0x11a   : > { %v1156_v55 = vadd.f32 %v1155_v54, %v464_v52  ;;  %v1157_v56 = vpop.f32.mrb[1].mxu1 }
 0x11b   : > { %v1158_v15 = vadd.f32 %v1157_v56, %v468_v53  ;;  %v1159_v57 = vpop.f32.mrb[2].mxu1  ;;  %v1198_v59 = vpop.f32.mrb[0].mxu0 }
 0x11c   : > { %v1160_v60 = vadd.f32 %v1159_v57, %v464_v52  ;;  %v1199_v61 = vadd.f32 %v1198_v59, %v1156_v55  ;;  %v1161_v62 = vpop.f32.mrb[3].mxu1  ;;  %v1200_v63 = vpop.f32.mrb[1].mxu0 }
 0x11d   : > { %v1162_v0 = vadd.f32 %v1161_v62, %v468_v53  ;;  %v1201_v1 = vadd.f32 %v1200_v63, %v1158_v15  ;;  %v1202_v2 = vpop.f32.mrb[2].mxu0 }
 0x11e   : > { %v1293_v3 = vmax.f32 %v1199_v61, 0.0  ;;  %v1203_v4 = vadd.f32 %v1202_v2, %v1160_v60  ;;  %v1204_v5 = vpop.f32.mrb[3].mxu0 }
 0x11f   : > { %v1205_v6 = vadd.f32 %v1204_v5, %v1162_v0  ;;  %v1294_v8 = vmax.f32 %v1201_v1, 0.0  ;;  %v1777_v0 = vld [vmem:[%s286_s25 + $0x10] sm:$0xff]  ;;  %v1778_v1 = vld [vmem:[%s286_s25 + $0x18] sm:$0xff] }
 0x120   : > { %v1297_v7 = vmax.f32 %v1203_v4, 0.0 }
 0x121   : > { %v1298_v9 = vmax.f32 %v1205_v6, 0.0 }
 0x122   : > { %v1301_v10 = vpack.c.bf16 %v1297_v7, %v1293_v3 }
 0x123   : > { %v1302_v11 = vpack.c.bf16 %v1298_v9, %v1294_v8 }
 0x125   : > { %1721 = vmatprep.mubr.bf16.mxu0 %v1302_v11 }
 0x126   : > { %1722 = vmatmul.mubr.bf16.vlgmr.msra.gmra.mrb[4].mxu0 %v1301_v10 }
 0x127   : > { %1733 = vmatpush1.bf16.msra.mxu0 %v2350_v58 }
 0x128   : > { %1734 = vmatprep.subr.bf16.mxu0 %v2355_v12 }
 0x12b   : > { %1735 = vmatpush1.bf16.msra.mxu0 %v2353_v13 }
 0x12c   : > { %1736 = vmatprep.subr.bf16.mxu0 %v2358_v14 }
 0x12f   : > { %1737 = vmatpush1.bf16.msra.mxu0 %v2356_v16 }
 0x130   : > { %1738 = vmatprep.subr.bf16.mxu0 %v2361_v17 }
 0x133   : > { %1739 = vmatpush1.bf16.msra.mxu0 %v2359_v18 }
 0x134   : > { %1740 = vmatprep.subr.bf16.mxu0 %v2364_v19 }
 0x137   : > { %1741 = vmatpush1.bf16.msra.mxu0 %v2362_v20 }
 0x138   : > { %1742 = vmatprep.subr.bf16.mxu0 %v2367_v21 }
 0x13b   : > { %1743 = vmatpush1.bf16.msra.mxu0 %v2365_v22 }
 0x13c   : > { %1744 = vmatprep.subr.bf16.mxu0 %v2370_v23 }
 0x13f   : > { %1745 = vmatpush1.bf16.msra.mxu0 %v2368_v24 }
 0x140   : > { %1746 = vmatprep.subr.bf16.mxu0 %v2373_v25 }
 0x143   : > { %1747 = vmatpush1.bf16.msra.mxu0 %v2371_v26 }
 0x144   : > { %1748 = vmatprep.subr.bf16.mxu0 %v2376_v27 }
 0x147   : > { %1749 = vmatpush1.bf16.msra.mxu0 %v2374_v28 }
 0x148   : > { %1750 = vmatprep.subr.bf16.mxu0 %v2379_v29 }
 0x14b   : > { %1751 = vmatpush1.bf16.msra.mxu0 %v2377_v30 }
 0x14c   : > { %1752 = vmatprep.subr.bf16.mxu0 %v2382_v31 }
 0x14f   : > { %1753 = vmatpush1.bf16.msra.mxu0 %v2380_v32 }
 0x150   : > { %1754 = vmatprep.subr.bf16.mxu0 %v2385_v33 }
 0x153   : > { %1755 = vmatpush1.bf16.msra.mxu0 %v2383_v34 }
 0x154   : > { %1756 = vmatprep.subr.bf16.mxu0 %v2388_v35 }
 0x157   : > { %1757 = vmatpush1.bf16.msra.mxu0 %v2386_v36 }
 0x158   : > { %1758 = vmatprep.subr.bf16.mxu0 %v2391_v37 }
 0x15b   : > { %1759 = vmatpush1.bf16.msra.mxu0 %v2389_v38 }
 0x15c   : > { %1760 = vmatprep.subr.bf16.mxu0 %v2394_v39 }
 0x15f   : > { %1761 = vmatpush1.bf16.msra.mxu0 %v2392_v40 }
 0x160   : > { %1762 = vmatprep.subr.bf16.mxu0 %v2397_v41 }
 0x163   : > { %1763 = vmatpush1.bf16.msra.mxu0 %v2395_v42 }
 0x199   : > { %v1284_v47 = vpop.f32.mrb[4].mxu1 }
 0x19a   : > { %v2086_v49 = vadd.f32 %v1284_v47, %v472_v45  ;;  %v1286_v51 = vpop.f32.mrb[5].mxu1 }
 0x19b   : > { %v2087_v52 = vadd.f32 %v1286_v51, %v476_v46  ;;  %v1288_v53 = vpop.f32.mrb[6].mxu1 }
 0x19c   : > { %v2088_v54 = vadd.f32 %v1288_v53, %v472_v45  ;;  %v1290_v55 = vpop.f32.mrb[7].mxu1  ;;  %v1295_v15 = vmax.f32 %v2086_v49, 0.0 }
 0x19d   : > { %v2089_v56 = vadd.f32 %v1290_v55, %v476_v46  ;;  %v1296_v59 = vmax.f32 %v2087_v52, 0.0 }
 0x19e   : > { %v1299_v57 = vmax.f32 %v2088_v54, 0.0 }
 0x19f   : > { %v1300_v60 = vmax.f32 %v2089_v56, 0.0 }
 0x1a0   : > { %v1303_v61 = vpack.c.bf16 %v1299_v57, %v1295_v15 }
 0x1a1   : > { %v1304_v62 = vpack.c.bf16 %v1300_v60, %v1296_v59 }
 0x1a3   : > { %1764 = vmatprep.mubr.bf16.mxu0 %v1304_v62 }
 0x1a4   : > { %1765 = vmatmul.mubr.bf16.vlgmr.msra.gmra.mrb[4].mxu0 %v1303_v61 }
 0x277   : > { %v1766_v63 = vpop.f32.mrb[4].mxu0 }
 0x278   : > { %v1779_v2 = vadd.f32 %v1775_v48, %v1766_v63  ;;  %v1768_v3 = vpop.f32.mrb[5].mxu0 }
 0x279   : > { %v1780_v4 = vadd.f32 %v1776_v50, %v1768_v3  ;;  %v1770_v5 = vpop.f32.mrb[6].mxu0 }
 0x27a   : > { %v1781_v6 = vadd.f32 %v1777_v0, %v1770_v5  ;;  %v1772_v7 = vpop.f32.mrb[7].mxu0  ;;  %1783 = vst [vmem:[%s291_s28] sm:$0xff] %v1779_v2 }
 0x27b   : > { %v1782_v8 = vadd.f32 %v1778_v1, %v1772_v7  ;;  %1784 = vst [vmem:[%s291_s28 + $0x8] sm:$0xff] %v1780_v4 }
 0x27c   : > { %1785 = vst [vmem:[%s291_s28 + $0x10] sm:$0xff] %v1781_v6 }
 0x27d   : > { %1786 = vst [vmem:[%s291_s28 + $0x18] sm:$0xff] %v1782_v8 }
 0x27e PF: > { %s16_s21 = sadd.s32 1, %s2404_s21  }
 0x27f   : > { %p13_p4 = scmp.ge.s32.totalorder %s16_s21, 4  }
 0x281   :  { %15 = sbr.rel (!%p13_p4) target bundleno = 1 (0x1), region = 80 }

</bundles_post_ra>
